<compile_context>
chip_gen: v6e
topology: v6e:2x2x1
jax: 0.10.0
libtpu: 0.0.40
codegen_flags: <defaults>
</compile_context>

<pallas_src>
import functools

import jax
import jax.numpy as jnp
from jax.experimental import pallas as pl
from jax.experimental.pallas import tpu as pltpu

EPS = 1e-5
NEG_MASK = -10000.0

# Contract last dims of both operands: q @ k.T without materializing a transpose.
_TRANS_B = (((1,), (1,)), ((), ()))


def _layer_norm(x, w, b):
    mu = jnp.mean(x, axis=-1, keepdims=True)
    var = jnp.mean((x - mu) ** 2, axis=-1, keepdims=True)
    return (x - mu) * jax.lax.rsqrt(var + EPS) * w + b


def _erf(x):
    # Abramowitz & Stegun 7.1.26, |abs err| <= 1.5e-7 (f32-exact in practice).
    # Uses only exp / add / mul / div / where, all of which lower in Mosaic.
    p = 0.3275911
    a1, a2, a3, a4, a5 = (0.254829592, -0.284496736, 1.421413741,
                          -1.453152027, 1.061405429)
    ax = jnp.abs(x)
    t = 1.0 / (1.0 + p * ax)
    poly = ((((a5 * t + a4) * t + a3) * t + a2) * t + a1) * t
    y = 1.0 - poly * jnp.exp(-ax * ax)
    return jnp.where(x < 0.0, -y, y)


def _gelu_exact(x):
    # nn.GELU() default: exact erf formulation.
    return 0.5 * x * (1.0 + _erf(x * (2.0 ** -0.5)))


def transformer_block_kernel(
    x_ref, mask_ref,
    ln1_w_ref, ln1_b_ref,
    wqkv_ref, bqkv_ref,
    wo_ref, bo_ref,
    ln2_w_ref, ln2_b_ref,
    w1_ref, b1_ref,
    w2_ref, b2_ref,
    o_ref,
    *, num_heads: int,
):
    # One batch element per grid step.
    x = x_ref[0]                                   # (S, E) f32
    S, E = x.shape
    H = num_heads
    D = E // H
    scale = D ** -0.5

    # Additive key mask built in-kernel from (1, S) binary mask (free VPU op,
    # no (S,S) HBM traffic / VMEM tile).
    add_mask = (1.0 - mask_ref[0]) * NEG_MASK      # (1, S) f32

    # ---- Pre-norm 1 + fused QKV projection (bf16 MXU, f32 accumulate) ------
    h = _layer_norm(x, ln1_w_ref[0], ln1_b_ref[0])
    qkv = jnp.dot(h.astype(jnp.bfloat16), wqkv_ref[...],
                  preferred_element_type=jnp.float32) + bqkv_ref[0]   # (S, 3E)
    q = (qkv[:, 0 * E:1 * E] * scale).astype(jnp.bfloat16)   # fold 1/sqrt(D) once
    k = qkv[:, 1 * E:2 * E].astype(jnp.bfloat16)
    v = qkv[:, 2 * E:3 * E].astype(jnp.bfloat16)

    # ---- Attention: per-head 2-D MXU matmuls (no head transposes, and only
    # one (S, S) score tile live per head instead of an (H, S, S) tensor). ----
    ctx_heads = []
    for hh in range(H):
        sl = slice(hh * D, (hh + 1) * D)
        qh = q[:, sl]
        kh = k[:, sl]
        vh = v[:, sl]

        s = jax.lax.dot_general(qh, kh, _TRANS_B,
                                preferred_element_type=jnp.float32)   # (S, S)
        s = s + add_mask
        s = s - jnp.max(s, axis=-1, keepdims=True)
        p = jnp.exp(s)
        p = p * pl.reciprocal(jnp.sum(p, axis=-1, keepdims=True), approx=True)

        ctx_heads.append(
            jnp.dot(p.astype(jnp.bfloat16), vh,
                    preferred_element_type=jnp.float32))              # (S, D)
    ctx = jnp.concatenate(ctx_heads, axis=-1)                         # (S, E)

    attn_out = jnp.dot(ctx.astype(jnp.bfloat16), wo_ref[...],
                       preferred_element_type=jnp.float32) + bo_ref[0]
    h1 = x + attn_out                                                 # residual

    # ---- Pre-norm 2 + feed-forward -----------------------------------------
    h2 = _layer_norm(h1, ln2_w_ref[0], ln2_b_ref[0])
    ff = jnp.dot(h2.astype(jnp.bfloat16), w1_ref[...],
                 preferred_element_type=jnp.float32) + b1_ref[0]
    ff = _gelu_exact(ff)
    ff = jnp.dot(ff.astype(jnp.bfloat16), w2_ref[...],
                 preferred_element_type=jnp.float32) + b2_ref[0]

    # TODO(synk): for large S/E add flash-style query tiling and 4E-chunked FFN
    # weight streaming so scores/weights stay within v7x's 64 MiB VMEM.
    o_ref[0] = (h1 + ff).astype(o_ref.dtype)


def transformer_block(hidden_states, params, attention_mask=None, *, num_heads):
    """hidden_states: (B, S, E) float32; attention_mask: (B, S) of 0/1 or None."""
    B, S, E = hidden_states.shape

    # Pass only the (B, 1, S) binary key mask; additive form is built in-kernel.
    if attention_mask is None:
        key_mask = jnp.ones((B, 1, S), jnp.float32)
    else:
        key_mask = attention_mask.astype(jnp.float32).reshape(B, 1, S)

    # One-time wrapper-side prep: transpose PyTorch (out,in) weights so the
    # kernel computes x @ W directly, cast matmul weights to bf16.
    def wt(w):
        return jnp.transpose(w).astype(jnp.bfloat16)

    def row(v):
        return v.reshape(1, -1).astype(jnp.float32)

    args = (
        hidden_states, key_mask,
        row(params["ln1_w"]), row(params["ln1_b"]),
        wt(params["in_proj_w"]), row(params["in_proj_b"]),
        wt(params["out_proj_w"]), row(params["out_proj_b"]),
        row(params["ln2_w"]), row(params["ln2_b"]),
        wt(params["ff1_w"]), row(params["ff1_b"]),
        wt(params["ff2_w"]), row(params["ff2_b"]),
    )

    # Weights / biases are identical for every grid step: a constant index_map
    # makes the pipeline fetch each of them exactly once (no per-step re-DMA).
    def const_spec(a):
        nd = a.ndim
        return pl.BlockSpec(a.shape, lambda b, _nd=nd: (0,) * _nd)

    in_specs = [
        pl.BlockSpec((1, S, E), lambda b: (b, 0, 0)),   # activations
        pl.BlockSpec((1, 1, S), lambda b: (b, 0, 0)),   # binary key mask
    ] + [const_spec(a) for a in args[2:]]

    kernel = functools.partial(transformer_block_kernel, num_heads=num_heads)

    return pl.pallas_call(
        kernel,
        out_shape=jax.ShapeDtypeStruct((B, S, E), hidden_states.dtype),
        grid=(B,),
        in_specs=in_specs,
        out_specs=pl.BlockSpec((1, S, E), lambda b: (b, 0, 0)),
        compiler_params=pltpu.CompilerParams(
            dimension_semantics=("parallel",),        # shard batch across TCs (v7x)
            vmem_limit_bytes=64 * 1024 * 1024),
    )(*args)


def init_params(key, hidden_dim):
    E = hidden_dim
    ks = jax.random.split(key, 8)
    s = 0.02
    return {
        "ln1_w": jnp.ones((E,), jnp.float32),
        "ln1_b": jnp.zeros((E,), jnp.float32),
        "in_proj_w": s * jax.random.normal(ks[0], (3 * E, E), jnp.float32),
        "in_proj_b": s * jax.random.normal(ks[1], (3 * E,), jnp.float32),
        "out_proj_w": s * jax.random.normal(ks[2], (E, E), jnp.float32),
        "out_proj_b": s * jax.random.normal(ks[3], (E,), jnp.float32),
        "ln2_w": jnp.ones((E,), jnp.float32),
        "ln2_b": jnp.zeros((E,), jnp.float32),
        "ff1_w": s * jax.random.normal(ks[4], (4 * E, E), jnp.float32),
        "ff1_b": s * jax.random.normal(ks[5], (4 * E,), jnp.float32),
        "ff2_w": s * jax.random.normal(ks[6], (E, 4 * E), jnp.float32),
        "ff2_b": s * jax.random.normal(ks[7], (E,), jnp.float32),
    }


if __name__ == "__main__":
    B, S, E, H = 2, 8, 32, 4
    key = jax.random.PRNGKey(0)
    kx, km, kp = jax.random.split(key, 3)

    x = jax.random.normal(kx, (B, S, E), jnp.float32)
    # binary attention mask (B, S): 1 = attend, 0 = masked
    attention_mask = (jax.random.uniform(km, (B, S)) > 0.2).astype(jnp.float32)
    params = init_params(kp, E)

    out = transformer_block(x, params, attention_mask, num_heads=H)
    out = jax.block_until_ready(out)
    assert out.shape == (B, S, E)
    assert bool(jnp.all(jnp.isfinite(out)))
    print("KERNEL_OK")
</pallas_src>

<mosaic_0001>
module attributes {stable_mosaic.version = 11 : i64} {
  func.func @transformer_block_kernel(%arg0: i32, %arg1: memref<1x8x32xf32, #tpu.memory_space<vmem>>, %arg2: memref<1x1x8xf32, #tpu.memory_space<vmem>>, %arg3: memref<1x32xf32, #tpu.memory_space<vmem>>, %arg4: memref<1x32xf32, #tpu.memory_space<vmem>>, %arg5: memref<32x96xbf16, #tpu.memory_space<vmem>>, %arg6: memref<1x96xf32, #tpu.memory_space<vmem>>, %arg7: memref<32x32xbf16, #tpu.memory_space<vmem>>, %arg8: memref<1x32xf32, #tpu.memory_space<vmem>>, %arg9: memref<1x32xf32, #tpu.memory_space<vmem>>, %arg10: memref<1x32xf32, #tpu.memory_space<vmem>>, %arg11: memref<32x128xbf16, #tpu.memory_space<vmem>>, %arg12: memref<1x128xf32, #tpu.memory_space<vmem>>, %arg13: memref<128x32xbf16, #tpu.memory_space<vmem>>, %arg14: memref<1x32xf32, #tpu.memory_space<vmem>>, %arg15: memref<1x8x32xf32, #tpu.memory_space<vmem>>) attributes {dimension_semantics = [#tpu.dimension_semantics<parallel>], iteration_bounds = array<i64: 2>, scalar_prefetch = 0 : i64, scratch_operands = 0 : i64, tpu.core_type = #tpu.core_type<tc>, window_params = [{transform_indices = @transform_0, window_bounds = array<i64: 1, 8, 32>}, {transform_indices = @transform_1, window_bounds = array<i64: 1, 1, 8>}, {pipeline_mode = #tpu.pipeline_mode<synchronous>, transform_indices = @transform_2, window_bounds = array<i64: 1, 32>}, {pipeline_mode = #tpu.pipeline_mode<synchronous>, transform_indices = @transform_3, window_bounds = array<i64: 1, 32>}, {pipeline_mode = #tpu.pipeline_mode<synchronous>, transform_indices = @transform_4, window_bounds = array<i64: 32, 96>}, {pipeline_mode = #tpu.pipeline_mode<synchronous>, transform_indices = @transform_5, window_bounds = array<i64: 1, 96>}, {pipeline_mode = #tpu.pipeline_mode<synchronous>, transform_indices = @transform_6, window_bounds = array<i64: 32, 32>}, {pipeline_mode = #tpu.pipeline_mode<synchronous>, transform_indices = @transform_7, window_bounds = array<i64: 1, 32>}, {pipeline_mode = #tpu.pipeline_mode<synchronous>, transform_indices = @transform_8, window_bounds = array<i64: 1, 32>}, {pipeline_mode = #tpu.pipeline_mode<synchronous>, transform_indices = @transform_9, window_bounds = array<i64: 1, 32>}, {pipeline_mode = #tpu.pipeline_mode<synchronous>, transform_indices = @transform_10, window_bounds = array<i64: 32, 128>}, {pipeline_mode = #tpu.pipeline_mode<synchronous>, transform_indices = @transform_11, window_bounds = array<i64: 1, 128>}, {pipeline_mode = #tpu.pipeline_mode<synchronous>, transform_indices = @transform_12, window_bounds = array<i64: 128, 32>}, {pipeline_mode = #tpu.pipeline_mode<synchronous>, transform_indices = @transform_13, window_bounds = array<i64: 1, 32>}, {transform_indices = @transform_14, window_bounds = array<i64: 1, 8, 32>}]} {
    %c0 = arith.constant 0 : index
    %c0_0 = arith.constant 0 : index
    %c0_1 = arith.constant 0 : index
    %0 = vector.load %arg1[%c0, %c0_0, %c0_1] : memref<1x8x32xf32, #tpu.memory_space<vmem>>, vector<1x8x32xf32>
    %1 = vector.shape_cast %0 : vector<1x8x32xf32> to vector<8x32xf32>
    %c0_2 = arith.constant 0 : index
    %c0_3 = arith.constant 0 : index
    %c0_4 = arith.constant 0 : index
    %2 = vector.load %arg2[%c0_2, %c0_3, %c0_4] : memref<1x1x8xf32, #tpu.memory_space<vmem>>, vector<1x1x8xf32>
    %3 = vector.shape_cast %2 : vector<1x1x8xf32> to vector<1x8xf32>
    %cst = arith.constant 1.000000e+00 : f32
    %4 = vector.broadcast %cst : f32 to vector<1x8xf32>
    %5 = arith.subf %4, %3 : vector<1x8xf32>
    %cst_5 = arith.constant -1.000000e+04 : f32
    %6 = vector.broadcast %cst_5 : f32 to vector<1x8xf32>
    %7 = arith.mulf %5, %6 : vector<1x8xf32>
    %c0_6 = arith.constant 0 : index
    %c0_7 = arith.constant 0 : index
    %8 = vector.load %arg3[%c0_6, %c0_7] : memref<1x32xf32, #tpu.memory_space<vmem>>, vector<1x32xf32>
    %9 = vector.shape_cast %8 : vector<1x32xf32> to vector<32xf32>
    %c0_8 = arith.constant 0 : index
    %c0_9 = arith.constant 0 : index
    %10 = vector.load %arg4[%c0_8, %c0_9] : memref<1x32xf32, #tpu.memory_space<vmem>>, vector<1x32xf32>
    %11 = vector.shape_cast %10 : vector<1x32xf32> to vector<32xf32>
    %cst_10 = arith.constant dense<0.000000e+00> : vector<8xf32>
    %12 = vector.multi_reduction <add>, %1, %cst_10 [1] : vector<8x32xf32> to vector<8xf32>
    %13 = vector.shape_cast %12 : vector<8xf32> to vector<8x1xf32>
    %cst_11 = arith.constant 3.200000e+01 : f32
    %14 = vector.broadcast %cst_11 : f32 to vector<8x1xf32>
    %15 = arith.divf %13, %14 : vector<8x1xf32>
    %16 = vector.broadcast %15 : vector<8x1xf32> to vector<8x32xf32>
    %17 = arith.subf %1, %16 : vector<8x32xf32>
    %18 = arith.mulf %17, %17 : vector<8x32xf32>
    %cst_12 = arith.constant dense<0.000000e+00> : vector<8xf32>
    %19 = vector.multi_reduction <add>, %18, %cst_12 [1] : vector<8x32xf32> to vector<8xf32>
    %20 = vector.shape_cast %19 : vector<8xf32> to vector<8x1xf32>
    %cst_13 = arith.constant 3.200000e+01 : f32
    %21 = vector.broadcast %cst_13 : f32 to vector<8x1xf32>
    %22 = arith.divf %20, %21 : vector<8x1xf32>
    %23 = vector.broadcast %15 : vector<8x1xf32> to vector<8x32xf32>
    %24 = arith.subf %1, %23 : vector<8x32xf32>
    %cst_14 = arith.constant 9.99999974E-6 : f32
    %25 = vector.broadcast %cst_14 : f32 to vector<8x1xf32>
    %26 = arith.addf %22, %25 : vector<8x1xf32>
    %27 = math.rsqrt %26 : vector<8x1xf32>
    %28 = vector.broadcast %27 : vector<8x1xf32> to vector<8x32xf32>
    %29 = arith.mulf %24, %28 : vector<8x32xf32>
    %30 = vector.shape_cast %9 : vector<32xf32> to vector<1x32xf32>
    %31 = vector.broadcast %30 : vector<1x32xf32> to vector<8x32xf32>
    %32 = arith.mulf %29, %31 : vector<8x32xf32>
    %33 = vector.shape_cast %11 : vector<32xf32> to vector<1x32xf32>
    %34 = vector.broadcast %33 : vector<1x32xf32> to vector<8x32xf32>
    %35 = arith.addf %32, %34 : vector<8x32xf32>
    %36 = arith.truncf %35 : vector<8x32xf32> to vector<8x32xbf16>
    %c0_15 = arith.constant 0 : index
    %c0_16 = arith.constant 0 : index
    %37 = vector.load %arg5[%c0_15, %c0_16] : memref<32x96xbf16, #tpu.memory_space<vmem>>, vector<32x96xbf16>
    %cst_17 = arith.constant dense<0.000000e+00> : vector<8x96xf32>
    %38 = tpu.matmul %36, %37, %cst_17 {dimension_numbers = #tpu.dot_dimension_numbers<[1], [0], [0], [1], [0, 0, 1, 1], [], []>} : vector<8x32xbf16>, vector<32x96xbf16>, vector<8x96xf32> -> vector<8x96xf32>
    %c0_18 = arith.constant 0 : index
    %c0_19 = arith.constant 0 : index
    %39 = vector.load %arg6[%c0_18, %c0_19] : memref<1x96xf32, #tpu.memory_space<vmem>>, vector<1x96xf32>
    %40 = vector.shape_cast %39 : vector<1x96xf32> to vector<96xf32>
    %41 = vector.shape_cast %40 : vector<96xf32> to vector<1x96xf32>
    %42 = vector.broadcast %41 : vector<1x96xf32> to vector<8x96xf32>
    %43 = arith.addf %38, %42 : vector<8x96xf32>
    %44 = vector.extract_strided_slice %43 {offsets = [0, 0], sizes = [8, 32], strides = [1, 1]} : vector<8x96xf32> to vector<8x32xf32>
    %cst_20 = arith.constant 0.353553385 : f32
    %45 = vector.broadcast %cst_20 : f32 to vector<8x32xf32>
    %46 = arith.mulf %44, %45 : vector<8x32xf32>
    %47 = arith.truncf %46 : vector<8x32xf32> to vector<8x32xbf16>
    %48 = vector.extract_strided_slice %43 {offsets = [0, 32], sizes = [8, 32], strides = [1, 1]} : vector<8x96xf32> to vector<8x32xf32>
    %49 = arith.truncf %48 : vector<8x32xf32> to vector<8x32xbf16>
    %50 = vector.extract_strided_slice %43 {offsets = [0, 64], sizes = [8, 32], strides = [1, 1]} : vector<8x96xf32> to vector<8x32xf32>
    %51 = arith.truncf %50 : vector<8x32xf32> to vector<8x32xbf16>
    %52 = vector.extract_strided_slice %47 {offsets = [0, 0], sizes = [8, 8], strides = [1, 1]} : vector<8x32xbf16> to vector<8x8xbf16>
    %53 = vector.extract_strided_slice %49 {offsets = [0, 0], sizes = [8, 8], strides = [1, 1]} : vector<8x32xbf16> to vector<8x8xbf16>
    %54 = vector.extract_strided_slice %51 {offsets = [0, 0], sizes = [8, 8], strides = [1, 1]} : vector<8x32xbf16> to vector<8x8xbf16>
    %cst_21 = arith.constant dense<0.000000e+00> : vector<8x8xf32>
    %55 = tpu.matmul %52, %53, %cst_21 {dimension_numbers = #tpu.dot_dimension_numbers<[1], [1], [0], [0], [0, 0, 1, 0], [], []>} : vector<8x8xbf16>, vector<8x8xbf16>, vector<8x8xf32> -> vector<8x8xf32>
    %56 = vector.broadcast %7 : vector<1x8xf32> to vector<8x8xf32>
    %57 = arith.addf %55, %56 : vector<8x8xf32>
    %cst_22 = arith.constant dense<0xFF800000> : vector<8xf32>
    %58 = vector.multi_reduction <maximumf>, %57, %cst_22 [1] : vector<8x8xf32> to vector<8xf32>
    %59 = vector.shape_cast %58 : vector<8xf32> to vector<8x1xf32>
    %60 = vector.broadcast %59 : vector<8x1xf32> to vector<8x8xf32>
    %61 = arith.subf %57, %60 : vector<8x8xf32>
    %62 = math.exp %61 : vector<8x8xf32>
    %cst_23 = arith.constant dense<0.000000e+00> : vector<8xf32>
    %63 = vector.multi_reduction <add>, %62, %cst_23 [1] : vector<8x8xf32> to vector<8xf32>
    %64 = vector.shape_cast %63 : vector<8xf32> to vector<8x1xf32>
    %65 = tpu.reciprocal %64 {approx = true} : vector<8x1xf32> -> vector<8x1xf32>
    %66 = vector.broadcast %65 : vector<8x1xf32> to vector<8x8xf32>
    %67 = arith.mulf %62, %66 : vector<8x8xf32>
    %68 = arith.truncf %67 : vector<8x8xf32> to vector<8x8xbf16>
    %cst_24 = arith.constant dense<0.000000e+00> : vector<8x8xf32>
    %69 = tpu.matmul %68, %54, %cst_24 {dimension_numbers = #tpu.dot_dimension_numbers<[1], [0], [0], [1], [0, 0, 1, 1], [], []>} : vector<8x8xbf16>, vector<8x8xbf16>, vector<8x8xf32> -> vector<8x8xf32>
    %70 = vector.extract_strided_slice %47 {offsets = [0, 8], sizes = [8, 8], strides = [1, 1]} : vector<8x32xbf16> to vector<8x8xbf16>
    %71 = vector.extract_strided_slice %49 {offsets = [0, 8], sizes = [8, 8], strides = [1, 1]} : vector<8x32xbf16> to vector<8x8xbf16>
    %72 = vector.extract_strided_slice %51 {offsets = [0, 8], sizes = [8, 8], strides = [1, 1]} : vector<8x32xbf16> to vector<8x8xbf16>
    %cst_25 = arith.constant dense<0.000000e+00> : vector<8x8xf32>
    %73 = tpu.matmul %70, %71, %cst_25 {dimension_numbers = #tpu.dot_dimension_numbers<[1], [1], [0], [0], [0, 0, 1, 0], [], []>} : vector<8x8xbf16>, vector<8x8xbf16>, vector<8x8xf32> -> vector<8x8xf32>
    %74 = vector.broadcast %7 : vector<1x8xf32> to vector<8x8xf32>
    %75 = arith.addf %73, %74 : vector<8x8xf32>
    %cst_26 = arith.constant dense<0xFF800000> : vector<8xf32>
    %76 = vector.multi_reduction <maximumf>, %75, %cst_26 [1] : vector<8x8xf32> to vector<8xf32>
    %77 = vector.shape_cast %76 : vector<8xf32> to vector<8x1xf32>
    %78 = vector.broadcast %77 : vector<8x1xf32> to vector<8x8xf32>
    %79 = arith.subf %75, %78 : vector<8x8xf32>
    %80 = math.exp %79 : vector<8x8xf32>
    %cst_27 = arith.constant dense<0.000000e+00> : vector<8xf32>
    %81 = vector.multi_reduction <add>, %80, %cst_27 [1] : vector<8x8xf32> to vector<8xf32>
    %82 = vector.shape_cast %81 : vector<8xf32> to vector<8x1xf32>
    %83 = tpu.reciprocal %82 {approx = true} : vector<8x1xf32> -> vector<8x1xf32>
    %84 = vector.broadcast %83 : vector<8x1xf32> to vector<8x8xf32>
    %85 = arith.mulf %80, %84 : vector<8x8xf32>
    %86 = arith.truncf %85 : vector<8x8xf32> to vector<8x8xbf16>
    %cst_28 = arith.constant dense<0.000000e+00> : vector<8x8xf32>
    %87 = tpu.matmul %86, %72, %cst_28 {dimension_numbers = #tpu.dot_dimension_numbers<[1], [0], [0], [1], [0, 0, 1, 1], [], []>} : vector<8x8xbf16>, vector<8x8xbf16>, vector<8x8xf32> -> vector<8x8xf32>
    %88 = vector.extract_strided_slice %47 {offsets = [0, 16], sizes = [8, 8], strides = [1, 1]} : vector<8x32xbf16> to vector<8x8xbf16>
    %89 = vector.extract_strided_slice %49 {offsets = [0, 16], sizes = [8, 8], strides = [1, 1]} : vector<8x32xbf16> to vector<8x8xbf16>
    %90 = vector.extract_strided_slice %51 {offsets = [0, 16], sizes = [8, 8], strides = [1, 1]} : vector<8x32xbf16> to vector<8x8xbf16>
    %cst_29 = arith.constant dense<0.000000e+00> : vector<8x8xf32>
    %91 = tpu.matmul %88, %89, %cst_29 {dimension_numbers = #tpu.dot_dimension_numbers<[1], [1], [0], [0], [0, 0, 1, 0], [], []>} : vector<8x8xbf16>, vector<8x8xbf16>, vector<8x8xf32> -> vector<8x8xf32>
    %92 = vector.broadcast %7 : vector<1x8xf32> to vector<8x8xf32>
    %93 = arith.addf %91, %92 : vector<8x8xf32>
    %cst_30 = arith.constant dense<0xFF800000> : vector<8xf32>
    %94 = vector.multi_reduction <maximumf>, %93, %cst_30 [1] : vector<8x8xf32> to vector<8xf32>
    %95 = vector.shape_cast %94 : vector<8xf32> to vector<8x1xf32>
    %96 = vector.broadcast %95 : vector<8x1xf32> to vector<8x8xf32>
    %97 = arith.subf %93, %96 : vector<8x8xf32>
    %98 = math.exp %97 : vector<8x8xf32>
    %cst_31 = arith.constant dense<0.000000e+00> : vector<8xf32>
    %99 = vector.multi_reduction <add>, %98, %cst_31 [1] : vector<8x8xf32> to vector<8xf32>
    %100 = vector.shape_cast %99 : vector<8xf32> to vector<8x1xf32>
    %101 = tpu.reciprocal %100 {approx = true} : vector<8x1xf32> -> vector<8x1xf32>
    %102 = vector.broadcast %101 : vector<8x1xf32> to vector<8x8xf32>
    %103 = arith.mulf %98, %102 : vector<8x8xf32>
    %104 = arith.truncf %103 : vector<8x8xf32> to vector<8x8xbf16>
    %cst_32 = arith.constant dense<0.000000e+00> : vector<8x8xf32>
    %105 = tpu.matmul %104, %90, %cst_32 {dimension_numbers = #tpu.dot_dimension_numbers<[1], [0], [0], [1], [0, 0, 1, 1], [], []>} : vector<8x8xbf16>, vector<8x8xbf16>, vector<8x8xf32> -> vector<8x8xf32>
    %106 = vector.extract_strided_slice %47 {offsets = [0, 24], sizes = [8, 8], strides = [1, 1]} : vector<8x32xbf16> to vector<8x8xbf16>
    %107 = vector.extract_strided_slice %49 {offsets = [0, 24], sizes = [8, 8], strides = [1, 1]} : vector<8x32xbf16> to vector<8x8xbf16>
    %108 = vector.extract_strided_slice %51 {offsets = [0, 24], sizes = [8, 8], strides = [1, 1]} : vector<8x32xbf16> to vector<8x8xbf16>
    %cst_33 = arith.constant dense<0.000000e+00> : vector<8x8xf32>
    %109 = tpu.matmul %106, %107, %cst_33 {dimension_numbers = #tpu.dot_dimension_numbers<[1], [1], [0], [0], [0, 0, 1, 0], [], []>} : vector<8x8xbf16>, vector<8x8xbf16>, vector<8x8xf32> -> vector<8x8xf32>
    %110 = vector.broadcast %7 : vector<1x8xf32> to vector<8x8xf32>
    %111 = arith.addf %109, %110 : vector<8x8xf32>
    %cst_34 = arith.constant dense<0xFF800000> : vector<8xf32>
    %112 = vector.multi_reduction <maximumf>, %111, %cst_34 [1] : vector<8x8xf32> to vector<8xf32>
    %113 = vector.shape_cast %112 : vector<8xf32> to vector<8x1xf32>
    %114 = vector.broadcast %113 : vector<8x1xf32> to vector<8x8xf32>
    %115 = arith.subf %111, %114 : vector<8x8xf32>
    %116 = math.exp %115 : vector<8x8xf32>
    %cst_35 = arith.constant dense<0.000000e+00> : vector<8xf32>
    %117 = vector.multi_reduction <add>, %116, %cst_35 [1] : vector<8x8xf32> to vector<8xf32>
    %118 = vector.shape_cast %117 : vector<8xf32> to vector<8x1xf32>
    %119 = tpu.reciprocal %118 {approx = true} : vector<8x1xf32> -> vector<8x1xf32>
    %120 = vector.broadcast %119 : vector<8x1xf32> to vector<8x8xf32>
    %121 = arith.mulf %116, %120 : vector<8x8xf32>
    %122 = arith.truncf %121 : vector<8x8xf32> to vector<8x8xbf16>
    %cst_36 = arith.constant dense<0.000000e+00> : vector<8x8xf32>
    %123 = tpu.matmul %122, %108, %cst_36 {dimension_numbers = #tpu.dot_dimension_numbers<[1], [0], [0], [1], [0, 0, 1, 1], [], []>} : vector<8x8xbf16>, vector<8x8xbf16>, vector<8x8xf32> -> vector<8x8xf32>
    %124 = tpu.concatenate %69, %87, %105, %123 in 1 : vector<8x8xf32>, vector<8x8xf32>, vector<8x8xf32>, vector<8x8xf32> -> vector<8x32xf32>
    %125 = arith.truncf %124 : vector<8x32xf32> to vector<8x32xbf16>
    %c0_37 = arith.constant 0 : index
    %c0_38 = arith.constant 0 : index
    %126 = vector.load %arg7[%c0_37, %c0_38] : memref<32x32xbf16, #tpu.memory_space<vmem>>, vector<32x32xbf16>
    %cst_39 = arith.constant dense<0.000000e+00> : vector<8x32xf32>
    %127 = tpu.matmul %125, %126, %cst_39 {dimension_numbers = #tpu.dot_dimension_numbers<[1], [0], [0], [1], [0, 0, 1, 1], [], []>} : vector<8x32xbf16>, vector<32x32xbf16>, vector<8x32xf32> -> vector<8x32xf32>
    %c0_40 = arith.constant 0 : index
    %c0_41 = arith.constant 0 : index
    %128 = vector.load %arg8[%c0_40, %c0_41] : memref<1x32xf32, #tpu.memory_space<vmem>>, vector<1x32xf32>
    %129 = vector.shape_cast %128 : vector<1x32xf32> to vector<32xf32>
    %130 = vector.shape_cast %129 : vector<32xf32> to vector<1x32xf32>
    %131 = vector.broadcast %130 : vector<1x32xf32> to vector<8x32xf32>
    %132 = arith.addf %127, %131 : vector<8x32xf32>
    %133 = arith.addf %1, %132 : vector<8x32xf32>
    %c0_42 = arith.constant 0 : index
    %c0_43 = arith.constant 0 : index
    %134 = vector.load %arg9[%c0_42, %c0_43] : memref<1x32xf32, #tpu.memory_space<vmem>>, vector<1x32xf32>
    %135 = vector.shape_cast %134 : vector<1x32xf32> to vector<32xf32>
    %c0_44 = arith.constant 0 : index
    %c0_45 = arith.constant 0 : index
    %136 = vector.load %arg10[%c0_44, %c0_45] : memref<1x32xf32, #tpu.memory_space<vmem>>, vector<1x32xf32>
    %137 = vector.shape_cast %136 : vector<1x32xf32> to vector<32xf32>
    %cst_46 = arith.constant dense<0.000000e+00> : vector<8xf32>
    %138 = vector.multi_reduction <add>, %133, %cst_46 [1] : vector<8x32xf32> to vector<8xf32>
    %139 = vector.shape_cast %138 : vector<8xf32> to vector<8x1xf32>
    %cst_47 = arith.constant 3.200000e+01 : f32
    %140 = vector.broadcast %cst_47 : f32 to vector<8x1xf32>
    %141 = arith.divf %139, %140 : vector<8x1xf32>
    %142 = vector.broadcast %141 : vector<8x1xf32> to vector<8x32xf32>
    %143 = arith.subf %133, %142 : vector<8x32xf32>
    %144 = arith.mulf %143, %143 : vector<8x32xf32>
    %cst_48 = arith.constant dense<0.000000e+00> : vector<8xf32>
    %145 = vector.multi_reduction <add>, %144, %cst_48 [1] : vector<8x32xf32> to vector<8xf32>
    %146 = vector.shape_cast %145 : vector<8xf32> to vector<8x1xf32>
    %cst_49 = arith.constant 3.200000e+01 : f32
    %147 = vector.broadcast %cst_49 : f32 to vector<8x1xf32>
    %148 = arith.divf %146, %147 : vector<8x1xf32>
    %149 = vector.broadcast %141 : vector<8x1xf32> to vector<8x32xf32>
    %150 = arith.subf %133, %149 : vector<8x32xf32>
    %cst_50 = arith.constant 9.99999974E-6 : f32
    %151 = vector.broadcast %cst_50 : f32 to vector<8x1xf32>
    %152 = arith.addf %148, %151 : vector<8x1xf32>
    %153 = math.rsqrt %152 : vector<8x1xf32>
    %154 = vector.broadcast %153 : vector<8x1xf32> to vector<8x32xf32>
    %155 = arith.mulf %150, %154 : vector<8x32xf32>
    %156 = vector.shape_cast %135 : vector<32xf32> to vector<1x32xf32>
    %157 = vector.broadcast %156 : vector<1x32xf32> to vector<8x32xf32>
    %158 = arith.mulf %155, %157 : vector<8x32xf32>
    %159 = vector.shape_cast %137 : vector<32xf32> to vector<1x32xf32>
    %160 = vector.broadcast %159 : vector<1x32xf32> to vector<8x32xf32>
    %161 = arith.addf %158, %160 : vector<8x32xf32>
    %162 = arith.truncf %161 : vector<8x32xf32> to vector<8x32xbf16>
    %c0_51 = arith.constant 0 : index
    %c0_52 = arith.constant 0 : index
    %163 = vector.load %arg11[%c0_51, %c0_52] : memref<32x128xbf16, #tpu.memory_space<vmem>>, vector<32x128xbf16>
    %cst_53 = arith.constant dense<0.000000e+00> : vector<8x128xf32>
    %164 = tpu.matmul %162, %163, %cst_53 {dimension_numbers = #tpu.dot_dimension_numbers<[1], [0], [0], [1], [0, 0, 1, 1], [], []>} : vector<8x32xbf16>, vector<32x128xbf16>, vector<8x128xf32> -> vector<8x128xf32>
    %c0_54 = arith.constant 0 : index
    %c0_55 = arith.constant 0 : index
    %165 = vector.load %arg12[%c0_54, %c0_55] : memref<1x128xf32, #tpu.memory_space<vmem>>, vector<1x128xf32>
    %166 = vector.shape_cast %165 : vector<1x128xf32> to vector<128xf32>
    %167 = vector.shape_cast %166 : vector<128xf32> to vector<1x128xf32>
    %168 = vector.broadcast %167 : vector<1x128xf32> to vector<8x128xf32>
    %169 = arith.addf %164, %168 : vector<8x128xf32>
    %cst_56 = arith.constant 5.000000e-01 : f32
    %170 = vector.broadcast %cst_56 : f32 to vector<8x128xf32>
    %171 = arith.mulf %170, %169 : vector<8x128xf32>
    %cst_57 = arith.constant 0.707106769 : f32
    %172 = vector.broadcast %cst_57 : f32 to vector<8x128xf32>
    %173 = arith.mulf %169, %172 : vector<8x128xf32>
    %174 = math.absf %173 : vector<8x128xf32>
    %cst_58 = arith.constant 0.327591091 : f32
    %175 = vector.broadcast %cst_58 : f32 to vector<8x128xf32>
    %176 = arith.mulf %175, %174 : vector<8x128xf32>
    %cst_59 = arith.constant 1.000000e+00 : f32
    %177 = vector.broadcast %cst_59 : f32 to vector<8x128xf32>
    %178 = arith.addf %177, %176 : vector<8x128xf32>
    %cst_60 = arith.constant 1.000000e+00 : f32
    %179 = vector.broadcast %cst_60 : f32 to vector<8x128xf32>
    %180 = arith.divf %179, %178 : vector<8x128xf32>
    %cst_61 = arith.constant 1.06140542 : f32
    %181 = vector.broadcast %cst_61 : f32 to vector<8x128xf32>
    %182 = arith.mulf %181, %180 : vector<8x128xf32>
    %cst_62 = arith.constant -1.45315206 : f32
    %183 = vector.broadcast %cst_62 : f32 to vector<8x128xf32>
    %184 = arith.addf %182, %183 : vector<8x128xf32>
    %185 = arith.mulf %184, %180 : vector<8x128xf32>
    %cst_63 = arith.constant 1.42141378 : f32
    %186 = vector.broadcast %cst_63 : f32 to vector<8x128xf32>
    %187 = arith.addf %185, %186 : vector<8x128xf32>
    %188 = arith.mulf %187, %180 : vector<8x128xf32>
    %cst_64 = arith.constant -0.284496725 : f32
    %189 = vector.broadcast %cst_64 : f32 to vector<8x128xf32>
    %190 = arith.addf %188, %189 : vector<8x128xf32>
    %191 = arith.mulf %190, %180 : vector<8x128xf32>
    %cst_65 = arith.constant 0.254829586 : f32
    %192 = vector.broadcast %cst_65 : f32 to vector<8x128xf32>
    %193 = arith.addf %191, %192 : vector<8x128xf32>
    %194 = arith.mulf %193, %180 : vector<8x128xf32>
    %cst_66 = arith.constant 0.000000e+00 : f32
    %195 = vector.broadcast %cst_66 : f32 to vector<8x128xf32>
    %196 = arith.subf %195, %174 : vector<8x128xf32>
    %197 = arith.mulf %196, %174 : vector<8x128xf32>
    %198 = math.exp %197 : vector<8x128xf32>
    %199 = arith.mulf %194, %198 : vector<8x128xf32>
    %cst_67 = arith.constant 1.000000e+00 : f32
    %200 = vector.broadcast %cst_67 : f32 to vector<8x128xf32>
    %201 = arith.subf %200, %199 : vector<8x128xf32>
    %cst_68 = arith.constant 0.000000e+00 : f32
    %202 = vector.broadcast %cst_68 : f32 to vector<8x128xf32>
    %203 = arith.cmpf olt, %173, %202 : vector<8x128xf32>
    %cst_69 = arith.constant 0.000000e+00 : f32
    %204 = vector.broadcast %cst_69 : f32 to vector<8x128xf32>
    %205 = arith.subf %204, %201 : vector<8x128xf32>
    %206 = arith.select %203, %205, %201 : vector<8x128xi1>, vector<8x128xf32>
    %cst_70 = arith.constant 1.000000e+00 : f32
    %207 = vector.broadcast %cst_70 : f32 to vector<8x128xf32>
    %208 = arith.addf %207, %206 : vector<8x128xf32>
    %209 = arith.mulf %171, %208 : vector<8x128xf32>
    %210 = arith.truncf %209 : vector<8x128xf32> to vector<8x128xbf16>
    %c0_71 = arith.constant 0 : index
    %c0_72 = arith.constant 0 : index
    %211 = vector.load %arg13[%c0_71, %c0_72] : memref<128x32xbf16, #tpu.memory_space<vmem>>, vector<128x32xbf16>
    %cst_73 = arith.constant dense<0.000000e+00> : vector<8x32xf32>
    %212 = tpu.matmul %210, %211, %cst_73 {dimension_numbers = #tpu.dot_dimension_numbers<[1], [0], [0], [1], [0, 0, 1, 1], [], []>} : vector<8x128xbf16>, vector<128x32xbf16>, vector<8x32xf32> -> vector<8x32xf32>
    %c0_74 = arith.constant 0 : index
    %c0_75 = arith.constant 0 : index
    %213 = vector.load %arg14[%c0_74, %c0_75] : memref<1x32xf32, #tpu.memory_space<vmem>>, vector<1x32xf32>
    %214 = vector.shape_cast %213 : vector<1x32xf32> to vector<32xf32>
    %215 = vector.shape_cast %214 : vector<32xf32> to vector<1x32xf32>
    %216 = vector.broadcast %215 : vector<1x32xf32> to vector<8x32xf32>
    %217 = arith.addf %212, %216 : vector<8x32xf32>
    %218 = arith.addf %133, %217 : vector<8x32xf32>
    %c0_76 = arith.constant 0 : index
    %c0_77 = arith.constant 0 : index
    %c0_78 = arith.constant 0 : index
    %219 = vector.load %arg15[%c0_76, %c0_77, %c0_78] : memref<1x8x32xf32, #tpu.memory_space<vmem>>, vector<1x8x32xf32>
    %220 = vector.shape_cast %219 : vector<1x8x32xf32> to vector<8x32xf32>
    %221 = vector.shape_cast %218 : vector<8x32xf32> to vector<1x8x32xf32>
    tpu.vector_store %arg15[%c0_76, %c0_77, %c0_78], %221 {strides = array<i32>} : memref<1x8x32xf32, #tpu.memory_space<vmem>>, vector<1x8x32xf32>,
    return
  }
  func.func @transform_0(%arg0: i32) -> (i32, i32, i32) {
    %c0_i32 = arith.constant 0 : i32
    %c0_i32_0 = arith.constant 0 : i32
    %c0_i32_1 = arith.constant 0 : i32
    return %arg0, %c0_i32, %c0_i32_0 : i32, i32, i32
  }
  func.func @transform_1(%arg0: i32) -> (i32, i32, i32) {
    %c0_i32 = arith.constant 0 : i32
    %c0_i32_0 = arith.constant 0 : i32
    %c0_i32_1 = arith.constant 0 : i32
    return %arg0, %c0_i32, %c0_i32_0 : i32, i32, i32
  }
  func.func @transform_2(%arg0: i32) -> (i32, i32) {
    %c0_i32 = arith.constant 0 : i32
    %c0_i32_0 = arith.constant 0 : i32
    %c0_i32_1 = arith.constant 0 : i32
    return %c0_i32, %c0_i32_0 : i32, i32
  }
  func.func @transform_3(%arg0: i32) -> (i32, i32) {
    %c0_i32 = arith.constant 0 : i32
    %c0_i32_0 = arith.constant 0 : i32
    %c0_i32_1 = arith.constant 0 : i32
    return %c0_i32, %c0_i32_0 : i32, i32
  }
  func.func @transform_4(%arg0: i32) -> (i32, i32) {
    %c0_i32 = arith.constant 0 : i32
    %c0_i32_0 = arith.constant 0 : i32
    %c0_i32_1 = arith.constant 0 : i32
    return %c0_i32, %c0_i32_0 : i32, i32
  }
  func.func @transform_5(%arg0: i32) -> (i32, i32) {
    %c0_i32 = arith.constant 0 : i32
    %c0_i32_0 = arith.constant 0 : i32
    %c0_i32_1 = arith.constant 0 : i32
    return %c0_i32, %c0_i32_0 : i32, i32
  }
  func.func @transform_6(%arg0: i32) -> (i32, i32) {
    %c0_i32 = arith.constant 0 : i32
    %c0_i32_0 = arith.constant 0 : i32
    %c0_i32_1 = arith.constant 0 : i32
    return %c0_i32, %c0_i32_0 : i32, i32
  }
  func.func @transform_7(%arg0: i32) -> (i32, i32) {
    %c0_i32 = arith.constant 0 : i32
    %c0_i32_0 = arith.constant 0 : i32
    %c0_i32_1 = arith.constant 0 : i32
    return %c0_i32, %c0_i32_0 : i32, i32
  }
  func.func @transform_8(%arg0: i32) -> (i32, i32) {
    %c0_i32 = arith.constant 0 : i32
    %c0_i32_0 = arith.constant 0 : i32
    %c0_i32_1 = arith.constant 0 : i32
    return %c0_i32, %c0_i32_0 : i32, i32
  }
  func.func @transform_9(%arg0: i32) -> (i32, i32) {
    %c0_i32 = arith.constant 0 : i32
    %c0_i32_0 = arith.constant 0 : i32
    %c0_i32_1 = arith.constant 0 : i32
    return %c0_i32, %c0_i32_0 : i32, i32
  }
  func.func @transform_10(%arg0: i32) -> (i32, i32) {
    %c0_i32 = arith.constant 0 : i32
    %c0_i32_0 = arith.constant 0 : i32
    %c0_i32_1 = arith.constant 0 : i32
    return %c0_i32, %c0_i32_0 : i32, i32
  }
  func.func @transform_11(%arg0: i32) -> (i32, i32) {
    %c0_i32 = arith.constant 0 : i32
    %c0_i32_0 = arith.constant 0 : i32
    %c0_i32_1 = arith.constant 0 : i32
    return %c0_i32, %c0_i32_0 : i32, i32
  }
  func.func @transform_12(%arg0: i32) -> (i32, i32) {
    %c0_i32 = arith.constant 0 : i32
    %c0_i32_0 = arith.constant 0 : i32
    %c0_i32_1 = arith.constant 0 : i32
    return %c0_i32, %c0_i32_0 : i32, i32
  }
  func.func @transform_13(%arg0: i32) -> (i32, i32) {
    %c0_i32 = arith.constant 0 : i32
    %c0_i32_0 = arith.constant 0 : i32
    %c0_i32_1 = arith.constant 0 : i32
    return %c0_i32, %c0_i32_0 : i32, i32
  }
  func.func @transform_14(%arg0: i32) -> (i32, i32, i32) {
    %c0_i32 = arith.constant 0 : i32
    %c0_i32_0 = arith.constant 0 : i32
    %c0_i32_1 = arith.constant 0 : i32
    return %arg0, %c0_i32, %c0_i32_0 : i32, i32, i32
  }
}

</mosaic_0001>

<bundles_post_ra>
// kernel: tpu_custom_call.1
= control target key start
LH: loop header
LB: loop body
LE: loop exit
PB: predicated region body
PF: predicated region fallthrough
CT: control target
= control target key end

     0   :  { %s2122_s0 = inlined_call_operand.vmem [shape: f32[2,8,32], index: 0, kind: input, shape index: {}]   ;;  %s2123_s1 = inlined_call_operand.vmem [shape: f32[2,1,8], index: 1, kind: input, shape index: {}]   ;;  %s2124_s2 = inlined_call_operand.vmem [shape: f32[1,32], index: 2, kind: input, shape index: {}]   ;;  %s2125_s3 = inlined_call_operand.vmem [shape: f32[1,32], index: 3, kind: input, shape index: {}]   ;;  %s2126_s4 = inlined_call_operand.vmem [shape: bf16[32,96], index: 4, kind: input, shape index: {}]   ;;  %s2127_s5 = inlined_call_operand.vmem [shape: f32[1,96], index: 5, kind: input, shape index: {}]   ;;  %s2128_s6 = inlined_call_operand.vmem [shape: bf16[32,32], index: 6, kind: input, shape index: {}]   ;;  %s2129_s7 = inlined_call_operand.vmem [shape: f32[1,32], index: 7, kind: input, shape index: {}]   ;;  %s2130_s8 = inlined_call_operand.vmem [shape: f32[1,32], index: 8, kind: input, shape index: {}]   ;;  %s2131_s9 = inlined_call_operand.vmem [shape: f32[1,32], index: 9, kind: input, shape index: {}]   ;;  %s2132_s10 = inlined_call_operand.vmem [shape: bf16[32,128], index: 10, kind: input, shape index: {}]   ;;  %s2133_s11 = inlined_call_operand.vmem [shape: f32[1,128], index: 11, kind: input, shape index: {}]   ;;  %s2134_s12 = inlined_call_operand.vmem [shape: bf16[128,32], index: 12, kind: input, shape index: {}]   ;;  %s2135_s13 = inlined_call_operand.vmem [shape: f32[1,32], index: 13, kind: input, shape index: {}]   ;;  %s2136_s14 = inlined_call_operand.hbm [shape: f32[2,8,32], index: 14, kind: output, shape index: {}]  }
   0x1   :  { %2137 = sst [smem:[#allocation5_spill]] %s2122_s0 }
   0x2   :  { %2138 = sst [smem:[#allocation6_spill]] %s2123_s1 }
   0x3   :  { %2139 = sst [smem:[#allocation7_spill]] %s2124_s2 }
   0x4   :  { %2140 = sst [smem:[#allocation8_spill]] %s2125_s3 }
   0x5   :  { %19 = vsyncpa [#allocation3], 0 }
   0x6   :  { %21 = vsyncpa [#allocation3 + $0x1], 0  ;;  %s1851_s29 = smov 0   ;;  %s1853_s30 = smov 0  }
   0x7   :  { %s1855_s15 = smov 0   ;;  %s1857_s16 = smov 0  }
   0x8 LB: > { %s1872_s17 = sadd.s32 4294967295, %s1757_s16   ;;  %s1435_s18 = sadd.s32 4294967294, %s1757_s16   ;;  %s1757_s16 = sphi %s1857_s16, %s2150_s16   ;;  %s1753_s15 = sphi %s1855_s15, %s2149_s15   ;;  %s1749_s30 = sphi %s1853_s30, %s2148_s30   ;;  %s1745_s29 = sphi %s1851_s29, %s2147_s29  }
   0x9   : > { %s1876_s19 = sadd.s32 1, %s1757_s16   ;;  %s338_s20 = sadd.s32 1, %s1753_s15 }
   0xa   : > { %s335_s21 = ssub.s32 %s1757_s16, %s1876_s19  ;;  %p348_p0 = scmp.ne.s32.totalorder %s1753_s15, %s1749_s30 }
   0xb   : > { %p336_p1 = scmp.eq.s32.totalorder %s335_s21, 0  ;;  %p349_p2 = scmp.eq.s32.totalorder %s1872_s17, 1 }
   0xc   : > { %p354_p3 = scmp.ne.s32.totalorder %s1749_s30, %s1745_s29  ;;  %p355_p4 = scmp.eq.s32.totalorder %s1435_s18, 1 }
   0xd   : > { %s1887_s22 = scalar_select %p336_p1, %s1753_s15, %s338_s20  }
   0xe   : > { %p1889_p5 = por %p349_p2, %p348_p0  ;;  %p1893_p6 = por %p355_p4, %p354_p3 }
   0xf   : > { %p1438_p7 = scmp.ge.s32.totalorder %s1757_s16, 1  ;;  %p422_p8 = scmp.lt.s32.totalorder %s1757_s16, 3 }
  0x11   : > { %p423_p9 = pnand %p1438_p7, %p422_p8 }
  0x12   : > { %p470_p10 = scmp.lt.s32.totalorder (!%p423_p9), %s1872_s17, 1  ;;  %s2143_s0 = sld [smem:[#allocation5_spill]] (!%p423_p9) }
  0x13   : > { %426 = sbr.rel (%p423_p9) target bundleno = 2506 (0x9ca), region = 76  ;;  %s2144_s2 = sld [smem:[#allocation7_spill]] (!%p423_p9) }
  0x14   : > { %s2145_s3 = sld [smem:[#allocation8_spill]] (!%p423_p9)  ;;  %s1761_s28 = smov (!%p423_p9), 96  }
  0x15   : > { %s1763_s20 = smov (!%p423_p9), 88   ;;  %s1764_s21 = smov (!%p423_p9), 80  }
  0x16   : > { %s1766_s27 = smov (!%p423_p9), 72   ;;  %s2146_s1 = sld [smem:[#allocation6_spill]] (!%p423_p9) }
  0x18   : > { %s1901_s25 = scalar_select %p470_p10, %s1872_s17, 1  ;;  %vm484_vm0 = vcmask 261120   ;;  %v1659_v7 = vld [vmem:[%s2126_s4 + $0x8] sm:$0xff]   ;;  %v1759_v8 = vmov 0.0   ;;  %vm1760_vm1 = vmmov 0   ;;  %v1660_v9 = vld [vmem:[%s2126_s4] sm:$0xff]   ;;  %v584_v40 = vlaneseq }
  0x19   : > { %1512 = vmatprep.subr.bf16.mxu0 %v1759_v8  ;;  %1516 = vmatprep.mubr.msk.bf16.mxu0 %vm1760_vm1, %v1759_v8  ;;  %v1441_v14 = vld [vmem:[%s2144_s2] ss:$0 sm:$0xff]  ;;  %vm592_vm2 = vcmask 64512   ;;  %vm656_vm3 = vcmask 1043456   ;;  %vm1044_vm4 = vcmask 130048   ;;  %vm1046_vm5 = vcmask 195584  }
  0x1a   : > { %s1440_s26 = sshll.u32 %s1901_s25, 3  ;;  %1513 = vmatpush3.bf16.msra.mxu0 %v1659_v7  ;;  %1532 = vmatprep.subr.bf16.mxu1 %v1759_v8  ;;  %v1442_v16 = vld [vmem:[%s2145_s3] ss:$0 sm:$0xff]  ;;  %v585_v43 = vshrl.u32 %v584_v40, 7 }
  0x1b   : > { %s473_s18 = scalar_lea.vmem %s2143_s0, %s1440_s26  ;;  %1514 = vmatprep.subr.bf16.mxu0 %v1759_v8  ;;  %1534 = vmatprep.mubr.msk.bf16.mxu1 %vm1760_vm1, %v1759_v8  ;;  %v1443_v20 = vld [vmem:[%s2127_s5] ss:$0 sm:$0xff]  ;;  %s1765_s26 = smov 112  }
  0x1c   : > { %v1907_v0 = vld [vmem:[%s473_s18] sm:$0xff]  ;;  %s1762_s18 = smov 120   ;;  %s1767_s0 = smov 104   ;;  %v586_v45 = vsub.s32 0, %v585_v43 }
  0x1d   : > { %v485_v1 = vsel %vm484_vm0, %v1907_v0, 0.0 }
  0x1e   : > { %486 = vadd.xlane.f32.xlu0 %v485_v1  ;;  %1515 = vmatpush3.bf16.msra.mxu0 %v1660_v9 }
  0x1f   : > { %1520 = vmatprep.subr.bf16.mxu0 %v1759_v8 }
  0xa7   : > { %v487_v2 = vpop.xlane.xlu0 %486 }
  0xa8   : > { %v489_v3 = vmul.f32 0.03125, %v487_v2 }
  0xaa   : > { %v490_v4 = vsub.f32 %v1907_v0, %v489_v3 }
  0xac   : > { %v491_v5 = vmul.f32 %v490_v4, %v490_v4 }
  0xae   : > { %v492_v6 = vsel %vm484_vm0, %v491_v5, 0.0 }
  0xaf   : > { %493 = vadd.xlane.f32.xlu0 %v492_v6 }
 0x138   : > { %v494_v10 = vpop.xlane.xlu0 %493 }
 0x139   : > { %v495_v11 = vmul.f32 0.03125, %v494_v10 }
 0x13b   : > { %v496_v12 = vadd.f32 1e-05, %v495_v11 }
 0x13d   : > { %1673 = vrsqrt.f32 %v496_v12 }
 0x14a   : > { %v1674_v13 = vpop.eup %1673 }
 0x14b   : > { %v498_v15 = vmul.f32 %v1674_v13, %v490_v4 }
 0x14d   : > { %v505_v17 = vmul.f32 %v1441_v14, %v498_v15 }
 0x14f   : > { %v512_v18 = vadd.f32 %v1442_v16, %v505_v17 }
 0x151   : > { %v513_v19 = vpack.c.bf16 %v512_v18, %v512_v18 }
 0x153   : > { %1517 = vmatmul.mubr.msk.bf16.vlgmr.msra.gmra.mxu0 %vm484_vm0, %v513_v19 }
 0x154   : > { %1522 = vmatprep.mubr.msk.bf16.mxu0 %vm1760_vm1, %v1759_v8 }
 0x213   : > { %v574_v21 = vpop.f32.mrf.mxu0 }
 0x214   : > { %v575_v22 = vadd.f32 %v1443_v20, %v574_v21 }
 0x215   : > { %v1518_v23 = vpop.f32.mrf.mxu0 }
 0x216   : > { %v580_v24 = vmul.f32 0.35355338, %v575_v22  ;;  %v1939_v25 = vpack.c.bf16 %v575_v22, %v575_v22 }
 0x217   : > { %v577_v26 = vpop.f32.mrf.mxu0 }
 0x218   : > { %v581_v27 = vpack.c.bf16 %v580_v24, %v580_v24  ;;  %590 = vrot.lane.b32.xlu1 %v1939_v25, %s1761_s28 }
 0x219   : > { %v1519_v28 = vpop.f32.mrf.mxu0 }
 0x21a   : > { %701 = vrot.lane.b32.xlu0 %v581_v27, %s1762_s18  ;;  %s476_s18 = scalar_lea.vmem %s2146_s1, %s1901_s25  ;;  %s1768_s25 = smov 64  }
 0x21b   : > { %v479_v41 = vld [vmem:[%s476_s18] sm:$0x1]  ;;  %s467_s18 = sand.u32 1, %s1749_s30  }
 0x21c   : > { %703 = vrot.lane.b32.xlu1 %v1939_v25, %s1763_s20  ;;  %v480_v42 = vsub.f32 1.0, %v479_v41  ;;  %s1769_s20 = smov 56  }
 0x21e   : > { %v481_v44 = vmul.f32 -10000.0, %v480_v42 }
 0x220   : > { %813 = vrot.lane.b32.xlu1 %v1939_v25, %s1764_s21  ;;  %v587_v46 = vrot.slane %v481_v44, %v586_v45  ;;  %s1770_s21 = smov 48  }
 0x224   : > { %811 = vrot.lane.b32.xlu1 %v581_v27, %s1765_s26  ;;  %s1771_s26 = smov 40  }
 0x228   : > { %923 = vrot.lane.b32.xlu1 %v1939_v25, %s1766_s27  ;;  %s1772_s27 = smov 8  }
 0x22c   : > { %921 = vrot.lane.b32.xlu1 %v581_v27, %s1767_s0 }
 0x28a   : > { %v591_v29 = vpop.permute.xlu1 %590 }
 0x28b   : > { %v597_v30 = vsel %vm592_vm2, %v591_v29, 0 }
 0x28c   : > { %1521 = vmatpush3.bf16.xpose.msra.mxu0 %v597_v30  ;;  %v702_v34 = vpop.permute.xlu0 %701 }
 0x28d   : > { %1526 = vmatprep.subr.bf16.mxu0 %v1759_v8 }
 0x28e   : > { %v704_v31 = vpop.permute.xlu1 %703 }
 0x28f   : > { %v709_v32 = vsel %vm592_vm2, %v704_v31, 0 }
 0x290   : > { %1533 = vmatpush3.bf16.xpose.msra.mxu1 %v709_v32 }
 0x291   : > { %1544 = vmatprep.subr.bf16.mxu1 %v1759_v8 }
 0x292   : > { %v814_v33 = vpop.permute.xlu1 %813 }
 0x293   : > { %1523 = vmatmul.mubr.msk.bf16.vlgmr.msra.gmra.mxu0 %vm592_vm2, %v581_v27  ;;  %v819_v36 = vsel %vm592_vm2, %v814_v33, 0 }
 0x294   : > { %1528 = vmatprep.mubr.msk.bf16.mxu0 %vm1760_vm1, %v1759_v8 }
 0x296   : > { %v812_v35 = vpop.permute.xlu1 %811 }
 0x297   : > { %1535 = vmatmul.mubr.msk.bf16.vlgmr.msra.gmra.mxu1 %vm592_vm2, %v702_v34 }
 0x298   : > { %1545 = vmatpush3.bf16.xpose.msra.mxu1 %v819_v36  ;;  %1546 = vmatprep.mubr.msk.bf16.mxu1 %vm1760_vm1, %v1759_v8 }
 0x299   : > { %1556 = vmatprep.subr.bf16.mxu1 %v1759_v8 }
 0x29a   : > { %v924_v37 = vpop.permute.xlu1 %923 }
 0x29b   : > { %v929_v38 = vsel %vm592_vm2, %v924_v37, 0 }
 0x29e   : > { %v922_v39 = vpop.permute.xlu1 %921 }
 0x29f   : > { %1547 = vmatmul.mubr.msk.bf16.vlgmr.msra.gmra.mxu1 %vm592_vm2, %v812_v35 }
 0x2a0   : > { %1557 = vmatpush3.bf16.xpose.msra.mxu1 %v929_v38  ;;  %1558 = vmatprep.mubr.msk.bf16.mxu1 %vm1760_vm1, %v1759_v8 }
 0x2a1   : > { %1568 = vmatprep.subr.bf16.mxu1 %v1759_v8 }
 0x2a7   : > { %1559 = vmatmul.mubr.msk.bf16.vlgmr.msra.gmra.mxu1 %vm592_vm2, %v922_v39 }
 0x2a8   : > { %1572 = vmatprep.mubr.msk.bf16.mxu1 %vm1760_vm1, %v1759_v8 }
 0x353   : > { %v633_v47 = vpop.f32.mrf.mxu0 }
 0x354   : > { %v634_v48 = vadd.f32 %v633_v47, %v587_v46 }
 0x355   : > { %v1524_v49 = vpop.f32.mrf.mxu0 }
 0x356   : > { %v639_v50 = vsel %vm592_vm2, %v634_v48, -inf }
 0x357   : > { %v745_v51 = vpop.f32.mrf.mxu1  ;;  %640 = vmax.xlane.f32.xlu1 %v639_v50  ;;  %v636_v52 = vpop.f32.mrf.mxu0 }
 0x358   : > { %v746_v53 = vadd.f32 %v745_v51, %v587_v46 }
 0x359   : > { %v1525_v54 = vpop.f32.mrf.mxu0  ;;  %v1536_v55 = vpop.f32.mrf.mxu1 }
 0x35a   : > { %v751_v56 = vsel %vm592_vm2, %v746_v53, -inf }
 0x35b   : > { %752 = vmax.xlane.f32.xlu0 %v751_v56  ;;  %v748_v57 = vpop.f32.mrf.mxu1 }
 0x35d   : > { %v1537_v58 = vpop.f32.mrf.mxu1 }
 0x35f   : > { %v855_v59 = vpop.f32.mrf.mxu1 }
 0x360   : > { %v856_v60 = vadd.f32 %v855_v59, %v587_v46 }
 0x361   : > { %v1548_v61 = vpop.f32.mrf.mxu1 }
 0x362   : > { %v861_v62 = vsel %vm592_vm2, %v856_v60, -inf  ;;  %v1661_v61 = vld [vmem:[%s2128_s6 + $0x8] sm:$0xff]  }
 0x363   : > { %v858_v63 = vpop.f32.mrf.mxu1  ;;  %862 = vmax.xlane.f32.xlu1 %v861_v62  ;;  %1569 = vmatpush3.bf16.msra.mxu1 %v1661_v61  ;;  %v1662_v62 = vld [vmem:[%s2128_s6] sm:$0xff]  }
 0x364   : > { %1570 = vmatprep.subr.bf16.mxu1 %v1759_v8 }
 0x365   : > { %v1549_v1 = vpop.f32.mrf.mxu1 }
 0x367   : > { %v965_v2 = vpop.f32.mrf.mxu1  ;;  %1571 = vmatpush3.bf16.msra.mxu1 %v1662_v62 }
 0x368   : > { %v966_v3 = vadd.f32 %v965_v2, %v587_v46  ;;  %1584 = vmatprep.subr.bf16.mxu1 %v1759_v8 }
 0x369   : > { %v1560_v4 = vpop.f32.mrf.mxu1 }
 0x36a   : > { %v971_v5 = vsel %vm592_vm2, %v966_v3, -inf }
 0x36b   : > { %972 = vmax.xlane.f32.xlu0 %v971_v5  ;;  %v968_v6 = vpop.f32.mrf.mxu1 }
 0x36d   : > { %v1561_v7 = vpop.f32.mrf.mxu1 }
 0x3e0   : > { %v641_v9 = vpop.xlane.xlu1 %640 }
 0x3e1   : > { %v642_v10 = vsub.f32 %v634_v48, %v641_v9 }
 0x3e3   : > { %v643_v11 = vmul.f32 1.442695, %v642_v10 }
 0x3e4   : > { %v753_v12 = vpop.xlane.xlu0 %752 }
 0x3e5   : > { %1675 = vpow2.f32 %v643_v11  ;;  %v754_v13 = vsub.f32 %v746_v53, %v753_v12 }
 0x3e7   : > { %v755_v14 = vmul.f32 1.442695, %v754_v13 }
 0x3e9   : > { %1677 = vpow2.f32 %v755_v14 }
 0x3ec   : > { %v863_v24 = vpop.xlane.xlu1 %862 }
 0x3ed   : > { %v864_v26 = vsub.f32 %v856_v60, %v863_v24 }
 0x3ef   : > { %v865_v27 = vmul.f32 1.442695, %v864_v26 }
 0x3f2   : > { %v1676_v15 = vpop.eup %1675 }
 0x3f3   : > { %v645_v16 = vsel %vm592_vm2, %v1676_v15, 0.0 }
 0x3f4   : > { %v973_v17 = vpop.xlane.xlu0 %972  ;;  %646 = vadd.xlane.f32.xlu1 %v645_v16  ;;  %v1455_v16 = vld [vmem:[%s2129_s7] ss:$0 sm:$0xff] }
 0x3f5   : > { %v974_v18 = vsub.f32 %v966_v3, %v973_v17 }
 0x3f6   : > { %v1678_v19 = vpop.eup %1677 }
 0x3f7   : > { %v975_v20 = vmul.f32 1.442695, %v974_v18  ;;  %v757_v21 = vsel %vm592_vm2, %v1678_v19, 0.0 }
 0x3f8   : > { %758 = vadd.xlane.f32.xlu0 %v757_v21 }
 0x3f9   : > { %1679 = vpow2.f32 %v975_v20 }
 0x3fa   : > { %1681 = vpow2.f32 %v865_v27 }
 0x405   : > { %651 = vrot.lane.b32.xlu1 %v1939_v25, %s1768_s25  ;;  %s1439_s25 = sshll.u32 %s467_s18, 3 }
 0x406   : > { %v1680_v22 = vpop.eup %1679 }
 0x407   : > { %v977_v23 = vsel %vm592_vm2, %v1680_v22, 0.0  ;;  %v1682_v28 = vpop.eup %1681 }
 0x408   : > { %978 = vadd.xlane.f32.xlu0 %v977_v23  ;;  %v867_v29 = vsel %vm592_vm2, %v1682_v28, 0.0 }
 0x41e   : > { %763 = vrot.lane.b32.xlu0 %v1939_v25, %s1769_s20  ;;  %s1773_s20 = smov 16  }
 0x429   : > { %868 = vadd.xlane.f32.xlu1 %v867_v29 }
 0x43a   : > { %873 = vrot.lane.b32.xlu1 %v1939_v25, %s1770_s21  ;;  %s1774_s21 = smov 24  }
 0x43e   : > { %983 = vrot.lane.b32.xlu1 %v1939_v25, %s1771_s26  ;;  %s1475_s26 = sshll.u32 %s1872_s17, 7  ;;  %s1354_s17 = scalar_lea.sflag [#allocation3], %s467_s18 }
 0x43f   : > { %s2080_s2 = scalar_lea.hbm %s2136_s14, %s1475_s26 }
 0x47d   : > { %v647_v30 = vpop.xlane.xlu1 %646 }
 0x47e   : > { %1683 = vrcp.f32 %v647_v30  ;;  %v1663_v30 = vld [vmem:[%s2132_s10 + $0x8] sm:$0xff]  }
 0x481   : > { %v759_v31 = vpop.xlane.xlu0 %758  ;;  %v652_v32 = vpop.permute.xlu1 %651 }
 0x482   : > { %v658_v33 = vsel %vm656_vm3, %v652_v32, 0  ;;  %1685 = vrcp.f32 %v759_v31 }
 0x483   : > { %1527 = vmatpush3.bf16.msra.mxu0 %v658_v33 }
 0x484   : > { %1538 = vmatprep.subr.bf16.mxu0 %v1759_v8 }
 0x48b   : > { %v1684_v34 = vpop.eup %1683 }
 0x48c   : > { %v649_v35 = vmul.f32 %v1684_v34, %v1676_v15 }
 0x48e   : > { %v650_v36 = vpack.c.bf16 %v649_v35, %v649_v35  ;;  %v1459_v35 = vld [vmem:[%s2130_s8] ss:$0 sm:$0xff] }
 0x48f   : > { %v1686_v37 = vpop.eup %1685 }
 0x490   : > { %1529 = vmatmul.mubr.msk.bf16.vlgmr.msra.gmra.mxu0 %vm592_vm2, %v650_v36  ;;  %v761_v25 = vmul.f32 %v1686_v37, %v1678_v19  ;;  %v1460_v37 = vld [vmem:[%s2131_s9] ss:$0 sm:$0xff] }
 0x491   : > { %v979_v38 = vpop.xlane.xlu0 %978  ;;  %1540 = vmatprep.mubr.msk.bf16.mxu0 %vm1760_vm1, %v1759_v8 }
 0x492   : > { %v762_v41 = vpack.c.bf16 %v761_v25, %v761_v25 }
 0x495   : > { %v764_v39 = vpop.permute.xlu0 %763 }
 0x496   : > { %v769_v40 = vsel %vm656_vm3, %v764_v39, 0 }
 0x497   : > { %1539 = vmatpush3.bf16.msra.mxu0 %v769_v40  ;;  %v1665_v40 = vld [vmem:[%s2134_s12 + $0x38] sm:$0xff]  }
 0x498   : > { %1550 = vmatprep.subr.bf16.mxu0 %v1759_v8 }
 0x49a   : > { %1541 = vmatmul.mubr.msk.bf16.vlgmr.msra.gmra.mxu0 %vm592_vm2, %v762_v41  ;;  %v1666_v41 = vld [vmem:[%s2134_s12 + $0x30] sm:$0xff]  }
 0x49b   : > { %1552 = vmatprep.mubr.msk.bf16.mxu0 %vm1760_vm1, %v1759_v8 }
 0x4b2   : > { %v869_v42 = vpop.xlane.xlu1 %868 }
 0x4b3   : > { %1687 = vrcp.f32 %v869_v42  ;;  %v1667_v42 = vld [vmem:[%s2134_s12 + $0x28] sm:$0xff]  }
 0x4b4   : > { %1689 = vrcp.f32 %v979_v38 }
 0x4b6   : > { %v874_v43 = vpop.permute.xlu1 %873 }
 0x4b7   : > { %v879_v44 = vsel %vm656_vm3, %v874_v43, 0  ;;  %v1668_v43 = vld [vmem:[%s2134_s12 + $0x20] sm:$0xff]  }
 0x4b8   : > { %1551 = vmatpush3.bf16.msra.mxu0 %v879_v44  ;;  %v1669_v44 = vld [vmem:[%s2134_s12 + $0x18] sm:$0xff]  }
 0x4b9   : > { %1562 = vmatprep.subr.bf16.mxu0 %v1759_v8 }
 0x4ba   : > { %v984_v47 = vpop.permute.xlu1 %983 }
 0x4bb   : > { %v989_v50 = vsel %vm656_vm3, %v984_v47, 0  ;;  %v1672_v47 = vld [vmem:[%s2134_s12] sm:$0xff]  }
 0x4c0   : > { %v1688_v45 = vpop.eup %1687 }
 0x4c1   : > { %v871_v46 = vmul.f32 %v1688_v45, %v1682_v28  ;;  %v1690_v49 = vpop.eup %1689  ;;  %v1670_v45 = vld [vmem:[%s2134_s12 + $0x10] sm:$0xff]  }
 0x4c2   : > { %v981_v51 = vmul.f32 %v1690_v49, %v1680_v22 }
 0x4c3   : > { %v872_v48 = vpack.c.bf16 %v871_v46, %v871_v46  ;;  %v1671_v46 = vld [vmem:[%s2134_s12 + $0x8] sm:$0xff]  }
 0x4c4   : > { %v982_v52 = vpack.c.bf16 %v981_v51, %v981_v51 }
 0x4c5   : > { %1553 = vmatmul.mubr.msk.bf16.vlgmr.msra.gmra.mxu0 %vm592_vm2, %v872_v48  ;;  %v1461_v48 = vld [vmem:[%s2133_s11] ss:$0 sm:$0xff] }
 0x4c6   : > { %1563 = vmatpush3.bf16.msra.mxu0 %v989_v50  ;;  %1564 = vmatprep.mubr.msk.bf16.mxu0 %vm1760_vm1, %v1759_v8 }
 0x4c7   : > { %1576 = vmatprep.subr.bf16.mxu0 %v1759_v8 }
 0x4cd   : > { %1565 = vmatmul.mubr.msk.bf16.vlgmr.msra.gmra.mxu0 %vm592_vm2, %v982_v52 }
 0x4ce   : > { %1580 = vmatprep.mubr.msk.bf16.mxu0 %vm1760_vm1, %v1759_v8  ;;  %1577 = vmatpush3.bf16.msra.mxu0 %v1663_v30 }
 0x4cf   : > { %1578 = vmatprep.subr.bf16.mxu0 %v1759_v8 }
 0x550   : > { %v694_v53 = vpop.f32.mrf.mxu0 }
 0x552   : > { %v1530_v54 = vpop.f32.mrf.mxu0 }
 0x554   : > { %v697_v55 = vpop.f32.mrf.mxu0 }
 0x556   : > { %v1531_v56 = vpop.f32.mrf.mxu0 }
 0x55a   : > { %v805_v57 = vpop.f32.mrf.mxu0 }
 0x55b   : > { %1032 = vrot.lane.b32.xlu0 %v805_v57, %s1772_s27  ;;  %s469_s27 = scalar_lea.vmem [#allocation2], %s1439_s25 }
 0x55c   : > { %v1542_v58 = vpop.f32.mrf.mxu0  ;;  %s1367_s0 = sshll.u32 %s469_s27, 4  ;;  %s2082_s0 = int_to_ptr.vmem [resolvable:$true] %s1367_s0 }
 0x55d   : > { %s1697_s25 = scalar_lea.vmem %s2082_s0, 128 }
 0x55e   : > { %v808_v59 = vpop.f32.mrf.mxu0  ;;  %p1698_p11 = scmp.ne.s32.totalorder %s2082_s0, %s1697_s25 }
 0x560   : > { %v1543_v60 = vpop.f32.mrf.mxu0  ;;  %p1699_p12 = pnand %p1698_p11, %p1889_p5 }
 0x562   : > { %p1700_p13 = pneg %p1699_p12 }
 0x585   : > { %v915_v63 = vpop.f32.mrf.mxu0 }
 0x586   : > { %1036 = vrot.lane.b32.xlu1 %v915_v63, %s1773_s20  ;;  %s1775_s20 = smov [#allocation2]  }
 0x587   : > { %v1554_v1 = vpop.f32.mrf.mxu0 }
 0x589   : > { %v918_v2 = vpop.f32.mrf.mxu0 }
 0x58b   : > { %v1555_v3 = vpop.f32.mrf.mxu0 }
 0x58d   : > { %v1025_v4 = vpop.f32.mrf.mxu0 }
 0x58e   : > { %1040 = vrot.lane.b32.xlu0 %v1025_v4, %s1774_s21  ;;  %s1701_s21 = sshll.u32 %s1775_s20, 4  ;;  %s1702_s21 = int_to_ptr.vmem [resolvable:$false] %s1701_s21 }
 0x58f   : > { %v1566_v5 = vpop.f32.mrf.mxu0  ;;  %s1703_s1 = scalar_lea.vmem %s1702_s21, 256  ;;  %p1704_p0 = scmp.lt.s32.totalorder %s2082_s0, %s1702_s21 }
 0x590   : > { %p1705_p1 = scmp.lt.s32.totalorder %s1703_s1, %s1697_s25 }
 0x591   : > { %v1028_v6 = vpop.f32.mrf.mxu0 }
 0x592   : > { %p1706_p2 = por %p1705_p1, %p1704_p0 }
 0x593   : > { %v1567_v7 = vpop.f32.mrf.mxu0 }
 0x594   : > { %p1707_p3 = pnand %p1706_p2, %p1700_p13 }
 0x5cd   : > { %v1033_v9 = vpop.permute.xlu0 %1032 }
 0x5ce   : > { %v1043_v11 = vsel %vm592_vm2, %v694_v53, %v1033_v9 }
 0x5f8   : > { %v1037_v10 = vpop.permute.xlu1 %1036 }
 0x5f9   : > { %v1045_v12 = vsel %vm1044_vm4, %v1043_v11, %v1037_v10 }
 0x600   : > { %v1041_v13 = vpop.permute.xlu0 %1040 }
 0x601   : > { %v1047_v14 = vsel %vm1046_vm5, %v1045_v12, %v1041_v13 }
 0x602   : > { %v1048_v15 = vpack.c.bf16 %v1047_v14, %v1047_v14 }
 0x604   : > { %1573 = vmatmul.mubr.msk.bf16.vlgmr.msra.gmra.mxu1 %vm484_vm0, %v1048_v15 }
 0x605   : > { %1600 = vmatprep.mubr.msk.bf16.mxu1 %vm1760_vm1, %v1759_v8  ;;  %1585 = vmatpush3.bf16.msra.mxu1 %v1665_v40 }
 0x606   : > { %1586 = vmatprep.subr.bf16.mxu1 %v1759_v8 }
 0x609   : > { %1587 = vmatpush3.bf16.msra.mxu1 %v1666_v41 }
 0x60a   : > { %1588 = vmatprep.subr.bf16.mxu1 %v1759_v8 }
 0x60d   : > { %1589 = vmatpush3.bf16.msra.mxu1 %v1667_v42 }
 0x60e   : > { %1590 = vmatprep.subr.bf16.mxu1 %v1759_v8 }
 0x611   : > { %1591 = vmatpush3.bf16.msra.mxu1 %v1668_v43 }
 0x612   : > { %1592 = vmatprep.subr.bf16.mxu1 %v1759_v8 }
 0x615   : > { %1593 = vmatpush3.bf16.msra.mxu1 %v1669_v44 }
 0x616   : > { %1594 = vmatprep.subr.bf16.mxu1 %v1759_v8 }
 0x619   : > { %1595 = vmatpush3.bf16.msra.mxu1 %v1670_v45 }
 0x61a   : > { %1596 = vmatprep.subr.bf16.mxu1 %v1759_v8 }
 0x61d   : > { %1597 = vmatpush3.bf16.msra.mxu1 %v1671_v46 }
 0x61e   : > { %1598 = vmatprep.subr.bf16.mxu1 %v1759_v8 }
 0x621   : > { %1599 = vmatpush3.bf16.msra.mxu1 %v1672_v47 }
 0x6c4   : > { %v1109_v17 = vpop.f32.mrf.mxu1 }
 0x6c5   : > { %v1110_v18 = vadd.f32 %v1455_v16, %v1109_v17  ;;  %v1465_v17 = vld [vmem:[%s2135_s13] ss:$0 sm:$0xff] }
 0x6c6   : > { %v1574_v19 = vpop.f32.mrf.mxu1 }
 0x6c7   : > { %v2017_v20 = vadd.f32 %v1110_v18, %v1907_v0  ;;  %v1664_v0 = vld [vmem:[%s2132_s10] sm:$0xff]  }
 0x6c8   : > { %v1112_v21 = vpop.f32.mrf.mxu1  ;;  %1579 = vmatpush3.bf16.msra.mxu0 %v1664_v0 }
 0x6c9   : > { %v1118_v22 = vsel %vm484_vm0, %v2017_v20, 0.0 }
 0x6ca   : > { %1119 = vadd.xlane.f32.xlu1 %v1118_v22  ;;  %v1575_v23 = vpop.f32.mrf.mxu1 }
 0x753   : > { %v1120_v24 = vpop.xlane.xlu1 %1119 }
 0x754   : > { %v1121_v26 = vmul.f32 0.03125, %v1120_v24 }
 0x756   : > { %v1122_v27 = vsub.f32 %v2017_v20, %v1121_v26 }
 0x758   : > { %v1123_v28 = vmul.f32 %v1122_v27, %v1122_v27 }
 0x75a   : > { %v1124_v29 = vsel %vm484_vm0, %v1123_v28, 0.0 }
 0x75b   : > { %1125 = vadd.xlane.f32.xlu0 %v1124_v29 }
 0x7e4   : > { %v1126_v31 = vpop.xlane.xlu0 %1125 }
 0x7e5   : > { %v1127_v32 = vmul.f32 0.03125, %v1126_v31 }
 0x7e7   : > { %v1128_v33 = vadd.f32 1e-05, %v1127_v32 }
 0x7e9   : > { %1691 = vrsqrt.f32 %v1128_v33 }
 0x7f6   : > { %v1692_v34 = vpop.eup %1691 }
 0x7f7   : > { %v1130_v36 = vmul.f32 %v1692_v34, %v1122_v27 }
 0x7f9   : > { %v1137_v38 = vmul.f32 %v1459_v35, %v1130_v36 }
 0x7fb   : > { %v1144_v25 = vadd.f32 %v1460_v37, %v1137_v38 }
 0x7fd   : > { %v1145_v39 = vpack.c.bf16 %v1144_v25, %v1144_v25 }
 0x7ff   : > { %1581 = vmatmul.mubr.msk.bf16.vlgmr.msra.gmra.mxu0 %vm484_vm0, %v1145_v39 }
 0x8bf   : > { %v1206_v49 = vpop.f32.mrf.mxu0 }
 0x8c0   : > { %v1207_v50 = vadd.f32 %v1461_v48, %v1206_v49 }
 0x8c1   : > { %v1582_v51 = vpop.f32.mrf.mxu0 }
 0x8c2   : > { %v1213_v52 = vmul.f32 0.70710677, %v1207_v50  ;;  %v1212_v13 = vmul.f32 0.5, %v1207_v50 }
 0x8c3   : > { %v1209_v53 = vpop.f32.mrf.mxu0 }
 0x8c4   : > { %v1214_v54 = vand.u32 2147483647, %v1213_v52  ;;  %vm1234_vm6 = vcmp.lt.f32.partialorder %v1213_v52, 0.0 }
 0x8c5   : > { %v1583_v55 = vpop.f32.mrf.mxu0 }
 0x8c6   : > { %v1215_v56 = vmul.f32 0.3275911, %v1214_v54  ;;  %v1228_v8 = vsub.f32 0.0, %v1214_v54 }
 0x8c8   : > { %v1216_v57 = vadd.f32 1.0, %v1215_v56  ;;  %v1229_v58 = vmul.f32 %v1228_v8, %v1214_v54 }
 0x8ca   : > { %1693 = vrcp.f32 %v1216_v57  ;;  %v1230_v61 = vmul.f32 1.442695, %v1229_v58 }
 0x8cc   : > { %1695 = vpow2.f32 %v1230_v61 }
 0x8d7   : > { %v1694_v59 = vpop.eup %1693 }
 0x8d8   : > { %v1219_v60 = vmul.f32 1.0614054, %v1694_v59 }
 0x8d9   : > { %v1696_v7 = vpop.eup %1695 }
 0x8da   : > { %v1220_v62 = vadd.f32 -1.4531521, %v1219_v60 }
 0x8dc   : > { %v1221_v63 = vmul.f32 %v1694_v59, %v1220_v62 }
 0x8de   : > { %v1222_v1 = vadd.f32 1.4214138, %v1221_v63 }
 0x8e0   : > { %v1223_v2 = vmul.f32 %v1694_v59, %v1222_v1 }
 0x8e2   : > { %v1224_v3 = vadd.f32 -0.28449672, %v1223_v2 }
 0x8e4   : > { %v1225_v4 = vmul.f32 %v1694_v59, %v1224_v3 }
 0x8e6   : > { %v1226_v5 = vadd.f32 0.2548296, %v1225_v4 }
 0x8e8   : > { %v1227_v6 = vmul.f32 %v1694_v59, %v1226_v5 }
 0x8ea   : > { %v1232_v9 = vmul.f32 %v1696_v7, %v1227_v6 }
 0x8ec   : > { %v1233_v10 = vsub.f32 1.0, %v1232_v9 }
 0x8ee   : > { %v1235_v11 = vsub.f32 0.0, %v1233_v10 }
 0x8f0   : > { %v1236_v12 = vsel %vm1234_vm6, %v1235_v11, %v1233_v10 }
 0x8f1   : > { %v1237_v14 = vadd.f32 1.0, %v1236_v12 }
 0x8f3   : > { %v1238_v15 = vmul.f32 %v1237_v14, %v1212_v13 }
 0x8f5   : > { %v1239_v16 = vpack.c.bf16 %v1238_v15, %v1238_v15 }
 0x8f7   : > { %1601 = vmatmul.mubr.bf16.vlgmr.msra.gmra.mxu1 %v1239_v16 }
 0x9b7   : > { %v1345_v18 = vpop.f32.mrf.mxu1 }
 0x9b8   : > { %v1346_v19 = vadd.f32 %v1465_v17, %v1345_v18 }
 0x9b9   : > { %v1602_v21 = vpop.f32.mrf.mxu1 }
 0x9ba   : > { %v1351_v22 = vadd.f32 %v1346_v19, %v2017_v20 }
 0x9bb   : > { %v1348_v23 = vpop.f32.mrf.mxu1 }
 0x9bc   : > { %1352 = vst.msk [vmem:[%s469_s27] sm:$0xff] %vm484_vm0, %v1351_v22 }
 0x9bd   : > { %v1603_v24 = vpop.f32.mrf.mxu1 }
 0x9be   : > { %1710 = shalt.err (!%p1707_p3)
}
 0x9bf   : > { %s1711_s26 = scalar_lea.hbm %s2080_s2, 128  ;;  %s1715_s28 = scalar_lea.hbm %s2136_s14, 256 }
 0x9c0   : > { %p1712_p4 = scmp.ne.s32.totalorder %s2080_s2, %s1711_s26  ;;  %p1716_p9 = scmp.lt.s32.totalorder %s2080_s2, %s2136_s14 }
 0x9c1   : > { %p1717_p10 = scmp.lt.s32.totalorder %s1715_s28, %s1711_s26 }
 0x9c2   : > { %p1713_p7 = pnand %p1712_p4, %p1889_p5 }
 0x9c3   : > { %p1718_p11 = por %p1717_p10, %p1716_p9 }
 0x9c4   : > { %p1714_p8 = pneg %p1713_p7 }
 0x9c6   : > { %p1719_p12 = pnand %p1718_p11, %p1714_p8 }
 0x9c8   : > { %1722 = shalt.err (!%p1719_p12)
}
 0x9c9   : > { %1604 = dma.vmem_to_hbm [thread:$0]  (%p1889_p5), %s2082_s0, 128, %s2080_s2, %s1354_s17  }
 0x9ca PF: > { %p1610_p13 = scmp.ge.s32.totalorder %s1757_s16, 2  ;;  %s1379_s25 = sand.u32 1, %s1745_s29  }
 0x9cb   : > { %s1380_s3 = scalar_lea.sflag [#allocation3], %s1379_s25 }
 0x9cc   : > { %p1607_p0 = pnand %p1610_p13, %p1893_p6 }
 0x9ce   : > { %p1608_p1 = pneg %p1607_p0 }
 0x9d0   : > { %1740 = dma.done.wait (%p1608_p1), %s1380_s3, 128  }
 0x9d1   : > { %1742 = vsyncadd (%p1608_p1), %s1380_s3, 4294967168  ;;  %p24_p2 = scmp.ge.s32.totalorder %s1876_s19, 4   ;;  %s2147_s29 = smov %s1749_s30 }
 0x9d2   : > { %s2148_s30 = smov %s1753_s15  ;;  %s2149_s15 = smov %s1887_s22 }
 0x9d3   : > { %s2150_s16 = smov %s1876_s19  ;;  %26 = sbr.rel (!%p24_p2) target bundleno = 8 (0x8), region = 114 }
 0x9d8   :  { %1385 = vsyncpa [#allocation3], 1 }
 0x9d9   :  { %1387 = vsyncpa [#allocation3 + $0x1], 1 }

</bundles_post_ra>
